<compile_context>
chip_gen: v7x
topology: tpu7x:2x2x1
jax: 0.10.0
libtpu: 0.0.40
codegen_flags: <defaults>
</compile_context>

<pallas_src>
import jax
import jax.numpy as jnp
from jax.experimental import pallas as pl
from jax.experimental.pallas import tpu as pltpu

LANES = 128


def odefunc_kernel(t_ref, y_ref, w1y_ref, w1t_ref, b1_ref,
                   w2_ref, b2_ref, w3_ref, b3_ref, o_ref):
    """Feature-major MLP: activations are [features, TB] (batch on lanes)."""
    t = t_ref[0, 0]                      # scalar from SMEM
    yv = y_ref[...]                      # [1, TB]  lane-dense batch row

    # Layer 1 (in_features = 2): fold the t contribution into an effective
    # per-feature bias ([H1, 1]) so the broadcast-FMA over [H1, TB] is a
    # single VPU mul-add, then a tanh on the EUP.
    bias1_eff = w1t_ref[...] * t + b1_ref[...]                  # [H1, 1]
    h1 = jnp.tanh(w1y_ref[...] * yv + bias1_eff)                # [H1, TB]

    # Layer 2 (H1 x H2 square): the only real matmul -> MXU, f32 accumulate.
    h2 = jnp.tanh(
        jnp.dot(w2_ref[...], h1, preferred_element_type=jnp.float32)
        + b2_ref[...]
    )                                                           # [H2, TB]

    # Layer 3 (out_features = 1): VPU multiply + XLU sublane reduce.
    o_ref[...] = (
        jnp.sum(h2 * w3_ref[...], axis=0, keepdims=True) + b3_ref[...]
    )                                                           # [1, TB]


def init_params(key, layer_sizes):
    """Deterministic Xavier-uniform-like weights ([in, out]), zero biases."""
    dims = [2] + list(layer_sizes) + [1]   # input_dim = 1 (y) + 1 (t) = 2
    params = []
    for i in range(len(dims) - 1):
        fan_in, fan_out = dims[i], dims[i + 1]
        key, sub = jax.random.split(key)
        limit = (6.0 / (fan_in + fan_out)) ** 0.5
        w = jax.random.uniform(
            sub, (fan_in, fan_out), jnp.float32, minval=-limit, maxval=limit
        )
        b = jnp.zeros((1, fan_out), jnp.float32)
        params.extend([w, b])
    return tuple(params)


def prepare_params(params):
    """One-time re-orientation to feature-major kernel layout."""
    w1, b1, w2, b2, w3, b3 = params        # w: [in, out], b: [1, out]
    w1_y = jnp.transpose(w1[0:1, :])       # [H1, 1]  weight column for y
    w1_t = jnp.transpose(w1[1:2, :])       # [H1, 1]  weight column for t
    b1c = jnp.transpose(b1)                # [H1, 1]
    w2t = jnp.transpose(w2)                # [H2, H1] (out, in) for W @ h
    b2c = jnp.transpose(b2)                # [H2, 1]
    w3c = w3                               # [H2, 1]  already feature-major
    b3c = b3                               # [1, 1]
    return (w1_y, w1_t, b1c, w2t, b2c, w3c, b3c)


def odefunc_forward(t, y, prepared_params, *, block_b=1024):
    """t: scalar, y: [B, 1] float32. Returns dydt: [B, 1] float32."""
    w1_y, w1_t, b1, w2t, b2, w3, b3 = prepared_params
    H1 = w1_y.shape[0]
    H2 = w2t.shape[0]
    B = y.shape[0]

    # Lane-dense batch layout: [B, 1] -> [1, B_pad], B_pad a multiple of TB.
    b_pad = max(LANES, pl.cdiv(B, LANES) * LANES)
    tb = min(block_b, b_pad)
    b_pad = pl.cdiv(b_pad, tb) * tb
    grid = (b_pad // tb,)

    y_row = jnp.pad(
        jnp.reshape(y.astype(jnp.float32), (1, B)), ((0, 0), (0, b_pad - B))
    )                                                      # [1, B_pad]
    t_arr = jnp.reshape(jnp.asarray(t, jnp.float32), (1, 1))

    out = pl.pallas_call(
        odefunc_kernel,
        grid=grid,
        in_specs=[
            pl.BlockSpec(memory_space=pltpu.MemorySpace.SMEM),   # t (1,1) scalar
            pl.BlockSpec((1, tb), lambda i: (0, i)),             # y  (lane-dense)
            pl.BlockSpec((H1, 1), lambda i: (0, 0)),             # w1_y (resident)
            pl.BlockSpec((H1, 1), lambda i: (0, 0)),             # w1_t (resident)
            pl.BlockSpec((H1, 1), lambda i: (0, 0)),             # b1   (resident)
            pl.BlockSpec((H2, H1), lambda i: (0, 0)),            # w2t  (resident)
            pl.BlockSpec((H2, 1), lambda i: (0, 0)),             # b2   (resident)
            pl.BlockSpec((H2, 1), lambda i: (0, 0)),             # w3   (resident)
            pl.BlockSpec((1, 1), lambda i: (0, 0)),              # b3   (resident)
        ],
        out_specs=pl.BlockSpec((1, tb), lambda i: (0, i)),       # lane-dense dydt
        out_shape=jax.ShapeDtypeStruct((1, b_pad), jnp.float32),
        compiler_params=pltpu.CompilerParams(
            dimension_semantics=("parallel",),   # shard batch over v7x's 2 TCs
        ),
    )(t_arr, y_row, w1_y, w1_t, b1, w2t, b2, w3, b3)

    return jnp.reshape(out[:, :B], (B, 1))


def reference_forward(t, y, params):
    w1, b1, w2, b2, w3, b3 = params
    B = y.shape[0]
    t_exp = jnp.broadcast_to(jnp.reshape(jnp.asarray(t, jnp.float32), (1, 1)), (B, 1))
    x = jnp.concatenate([y, t_exp], axis=-1)
    h = jnp.tanh(x @ w1 + b1)
    h = jnp.tanh(h @ w2 + b2)
    return h @ w3 + b3


if __name__ == "__main__":
    key = jax.random.PRNGKey(0)
    layer_sizes = (32, 32)                 # two hidden layers of width 32
    params = init_params(key, layer_sizes)
    prepared = prepare_params(params)

    key_y, _ = jax.random.split(jax.random.PRNGKey(0))
    B = 8
    y = jax.random.normal(key_y, (B, 1), jnp.float32)
    t = jnp.float32(0.5)

    dydt = odefunc_forward(t, y, prepared)
    dydt = jax.block_until_ready(dydt)

    ref = reference_forward(t, y, params)
    assert dydt.shape == (B, 1)
    assert jnp.allclose(dydt, ref, atol=1e-5, rtol=1e-5)
    print("KERNEL_OK")
</pallas_src>

<mosaic_0001>
module attributes {stable_mosaic.version = 11 : i64} {
  func.func @odefunc_kernel(%arg0: i32, %arg1: memref<1x1xf32, #tpu.memory_space<smem>>, %arg2: memref<1x128xf32, #tpu.memory_space<vmem>>, %arg3: memref<32x1xf32, #tpu.memory_space<vmem>>, %arg4: memref<32x1xf32, #tpu.memory_space<vmem>>, %arg5: memref<32x1xf32, #tpu.memory_space<vmem>>, %arg6: memref<32x32xf32, #tpu.memory_space<vmem>>, %arg7: memref<32x1xf32, #tpu.memory_space<vmem>>, %arg8: memref<32x1xf32, #tpu.memory_space<vmem>>, %arg9: memref<1x1xf32, #tpu.memory_space<vmem>>, %arg10: memref<1x128xf32, #tpu.memory_space<vmem>>) attributes {dimension_semantics = [#tpu.dimension_semantics<parallel>], iteration_bounds = array<i64: 1>, scalar_prefetch = 0 : i64, scratch_operands = 0 : i64, tpu.core_type = #tpu.core_type<tc>, window_params = [{transform_indices = @transform_0, window_bounds = array<i64: 1, 1>}, {transform_indices = @transform_1, window_bounds = array<i64: 1, 128>}, {pipeline_mode = #tpu.pipeline_mode<synchronous>, transform_indices = @transform_2, window_bounds = array<i64: 32, 1>}, {pipeline_mode = #tpu.pipeline_mode<synchronous>, transform_indices = @transform_3, window_bounds = array<i64: 32, 1>}, {pipeline_mode = #tpu.pipeline_mode<synchronous>, transform_indices = @transform_4, window_bounds = array<i64: 32, 1>}, {pipeline_mode = #tpu.pipeline_mode<synchronous>, transform_indices = @transform_5, window_bounds = array<i64: 32, 32>}, {pipeline_mode = #tpu.pipeline_mode<synchronous>, transform_indices = @transform_6, window_bounds = array<i64: 32, 1>}, {pipeline_mode = #tpu.pipeline_mode<synchronous>, transform_indices = @transform_7, window_bounds = array<i64: 32, 1>}, {pipeline_mode = #tpu.pipeline_mode<synchronous>, transform_indices = @transform_8, window_bounds = array<i64: 1, 1>}, {transform_indices = @transform_9, window_bounds = array<i64: 1, 128>}]} {
    %c0 = arith.constant 0 : index
    %c0_0 = arith.constant 0 : index
    %0 = memref.load %arg1[%c0, %c0_0] : memref<1x1xf32, #tpu.memory_space<smem>>
    %c0_1 = arith.constant 0 : index
    %c0_2 = arith.constant 0 : index
    %1 = vector.load %arg2[%c0_1, %c0_2] : memref<1x128xf32, #tpu.memory_space<vmem>>, vector<1x128xf32>
    %c0_3 = arith.constant 0 : index
    %c0_4 = arith.constant 0 : index
    %2 = vector.load %arg4[%c0_3, %c0_4] : memref<32x1xf32, #tpu.memory_space<vmem>>, vector<32x1xf32>
    %3 = vector.broadcast %0 : f32 to vector<32x1xf32>
    %4 = arith.mulf %2, %3 : vector<32x1xf32>
    %c0_5 = arith.constant 0 : index
    %c0_6 = arith.constant 0 : index
    %5 = vector.load %arg5[%c0_5, %c0_6] : memref<32x1xf32, #tpu.memory_space<vmem>>, vector<32x1xf32>
    %6 = arith.addf %4, %5 : vector<32x1xf32>
    %c0_7 = arith.constant 0 : index
    %c0_8 = arith.constant 0 : index
    %7 = vector.load %arg3[%c0_7, %c0_8] : memref<32x1xf32, #tpu.memory_space<vmem>>, vector<32x1xf32>
    %8 = vector.broadcast %7 : vector<32x1xf32> to vector<32x128xf32>
    %9 = vector.broadcast %1 : vector<1x128xf32> to vector<32x128xf32>
    %10 = arith.mulf %8, %9 : vector<32x128xf32>
    %11 = vector.broadcast %6 : vector<32x1xf32> to vector<32x128xf32>
    %12 = arith.addf %10, %11 : vector<32x128xf32>
    %13 = math.tanh %12 : vector<32x128xf32>
    %c0_9 = arith.constant 0 : index
    %c0_10 = arith.constant 0 : index
    %14 = vector.load %arg6[%c0_9, %c0_10] : memref<32x32xf32, #tpu.memory_space<vmem>>, vector<32x32xf32>
    %cst = arith.constant dense<0.000000e+00> : vector<32x128xf32>
    %15 = tpu.matmul %14, %13, %cst {dimension_numbers = #tpu.dot_dimension_numbers<[1], [0], [0], [1], [0, 0, 1, 1], [], []>} : vector<32x32xf32>, vector<32x128xf32>, vector<32x128xf32> -> vector<32x128xf32>
    %c0_11 = arith.constant 0 : index
    %c0_12 = arith.constant 0 : index
    %16 = vector.load %arg7[%c0_11, %c0_12] : memref<32x1xf32, #tpu.memory_space<vmem>>, vector<32x1xf32>
    %17 = vector.broadcast %16 : vector<32x1xf32> to vector<32x128xf32>
    %18 = arith.addf %15, %17 : vector<32x128xf32>
    %19 = math.tanh %18 : vector<32x128xf32>
    %c0_13 = arith.constant 0 : index
    %c0_14 = arith.constant 0 : index
    %20 = vector.load %arg8[%c0_13, %c0_14] : memref<32x1xf32, #tpu.memory_space<vmem>>, vector<32x1xf32>
    %21 = vector.broadcast %20 : vector<32x1xf32> to vector<32x128xf32>
    %22 = arith.mulf %19, %21 : vector<32x128xf32>
    %cst_15 = arith.constant dense<0.000000e+00> : vector<128xf32>
    %23 = vector.multi_reduction <add>, %22, %cst_15 [0] : vector<32x128xf32> to vector<128xf32>
    %24 = vector.shape_cast %23 : vector<128xf32> to vector<1x128xf32>
    %c0_16 = arith.constant 0 : index
    %c0_17 = arith.constant 0 : index
    %25 = vector.load %arg9[%c0_16, %c0_17] : memref<1x1xf32, #tpu.memory_space<vmem>>, vector<1x1xf32>
    %26 = vector.broadcast %25 : vector<1x1xf32> to vector<1x128xf32>
    %27 = arith.addf %24, %26 : vector<1x128xf32>
    %c0_18 = arith.constant 0 : index
    %c0_19 = arith.constant 0 : index
    %28 = vector.load %arg10[%c0_18, %c0_19] : memref<1x128xf32, #tpu.memory_space<vmem>>, vector<1x128xf32>
    tpu.vector_store %arg10[%c0_18, %c0_19], %27 {strides = array<i32>} : memref<1x128xf32, #tpu.memory_space<vmem>>, vector<1x128xf32>,
    return
  }
  func.func @transform_0(%arg0: i32) -> (i32, i32) {
    %c0_i32 = arith.constant 0 : i32
    %c0_i32_0 = arith.constant 0 : i32
    %c0_i32_1 = arith.constant 0 : i32
    return %c0_i32, %c0_i32_0 : i32, i32
  }
  func.func @transform_1(%arg0: i32) -> (i32, i32) {
    %c0_i32 = arith.constant 0 : i32
    %c0_i32_0 = arith.constant 0 : i32
    return %c0_i32, %arg0 : i32, i32
  }
  func.func @transform_2(%arg0: i32) -> (i32, i32) {
    %c0_i32 = arith.constant 0 : i32
    %c0_i32_0 = arith.constant 0 : i32
    %c0_i32_1 = arith.constant 0 : i32
    return %c0_i32, %c0_i32_0 : i32, i32
  }
  func.func @transform_3(%arg0: i32) -> (i32, i32) {
    %c0_i32 = arith.constant 0 : i32
    %c0_i32_0 = arith.constant 0 : i32
    %c0_i32_1 = arith.constant 0 : i32
    return %c0_i32, %c0_i32_0 : i32, i32
  }
  func.func @transform_4(%arg0: i32) -> (i32, i32) {
    %c0_i32 = arith.constant 0 : i32
    %c0_i32_0 = arith.constant 0 : i32
    %c0_i32_1 = arith.constant 0 : i32
    return %c0_i32, %c0_i32_0 : i32, i32
  }
  func.func @transform_5(%arg0: i32) -> (i32, i32) {
    %c0_i32 = arith.constant 0 : i32
    %c0_i32_0 = arith.constant 0 : i32
    %c0_i32_1 = arith.constant 0 : i32
    return %c0_i32, %c0_i32_0 : i32, i32
  }
  func.func @transform_6(%arg0: i32) -> (i32, i32) {
    %c0_i32 = arith.constant 0 : i32
    %c0_i32_0 = arith.constant 0 : i32
    %c0_i32_1 = arith.constant 0 : i32
    return %c0_i32, %c0_i32_0 : i32, i32
  }
  func.func @transform_7(%arg0: i32) -> (i32, i32) {
    %c0_i32 = arith.constant 0 : i32
    %c0_i32_0 = arith.constant 0 : i32
    %c0_i32_1 = arith.constant 0 : i32
    return %c0_i32, %c0_i32_0 : i32, i32
  }
  func.func @transform_8(%arg0: i32) -> (i32, i32) {
    %c0_i32 = arith.constant 0 : i32
    %c0_i32_0 = arith.constant 0 : i32
    %c0_i32_1 = arith.constant 0 : i32
    return %c0_i32, %c0_i32_0 : i32, i32
  }
  func.func @transform_9(%arg0: i32) -> (i32, i32) {
    %c0_i32 = arith.constant 0 : i32
    %c0_i32_0 = arith.constant 0 : i32
    return %c0_i32, %arg0 : i32, i32
  }
}

</mosaic_0001>

<bundles_post_ra>
// kernel: tpu_custom_call.1
= control target key start
LH: loop header
LB: loop body
LE: loop exit
PB: predicated region body
PF: predicated region fallthrough
CT: control target
= control target key end

     0   :  { %s542_s0 = inlined_call_operand.<no memory space> [shape: f32[1,1], index: 0, kind: input, shape index: {}]   ;;  %s543_s1 = inlined_call_operand.vmem [shape: f32[1,128], index: 1, kind: input, shape index: {}]   ;;  %s544_s2 = inlined_call_operand.vmem [shape: f32[32,1], index: 2, kind: input, shape index: {}]   ;;  %s545_s3 = inlined_call_operand.vmem [shape: f32[32,1], index: 3, kind: input, shape index: {}]   ;;  %s546_s4 = inlined_call_operand.vmem [shape: f32[32,1], index: 4, kind: input, shape index: {}]   ;;  %s547_s5 = inlined_call_operand.vmem [shape: f32[32,32], index: 5, kind: input, shape index: {}]   ;;  %s548_s6 = inlined_call_operand.vmem [shape: f32[32,1], index: 6, kind: input, shape index: {}]   ;;  %s549_s7 = inlined_call_operand.vmem [shape: f32[32,1], index: 7, kind: input, shape index: {}]   ;;  %s550_s8 = inlined_call_operand.<no memory space> [shape: f32[1,1], index: 8, kind: input, shape index: {}]   ;;  %s551_s9 = inlined_call_operand.hbm [shape: f32[1,128], index: 9, kind: output, shape index: {}]  }
   0x1   :  { %v15_v0 = vstv %s550_s8 }
   0x2   :  { %16 = vst [vmem:[#allocation3] sm:$0x1] %v15_v0 }
   0x3   :  { %v55_v1 = vld [vmem:[%s544_s2] sm:$0xff]  ;;  %v42_v3 = vstv %s542_s0  ;;  %v393_v5 = vmov 0   ;;  %v39_v7 = vld [vmem:[%s545_s3 + $0x8] sm:$0xff]  ;;  %v40_v12 = vld [vmem:[%s545_s3 + $0x10] sm:$0xff] }
   0x4   :  { %v38_v2 = vld [vmem:[%s545_s3] sm:$0xff]  ;;  %351 = vset.pattern.permute.xlu0 %v393_v5  ;;  %352 = vset.pattern.permute.xlu1 %v393_v5  ;;  %v44_v8 = vmul.f32 %v42_v3, %v39_v7  ;;  %v48_v9 = vld [vmem:[%s546_s4 + $0x8] sm:$0xff]  ;;  %v45_v14 = vmul.f32 %v42_v3, %v40_v12  ;;  %v41_v15 = vld [vmem:[%s545_s3 + $0x18] sm:$0xff] }
   0x5   :  { %v47_v4 = vld [vmem:[%s546_s4] sm:$0xff]  ;;  %v43_v6 = vmul.f32 %v42_v3, %v38_v2  ;;  %61 = vperm.xlu0 %351, %v55_v1   ;;  %v56_v11 = vld [vmem:[%s544_s2 + $0x8] sm:$0xff]  ;;  %v57_v16 = vld [vmem:[%s544_s2 + $0x10] sm:$0xff] }
   0x6   :  { %v52_v13 = vadd.f32 %v48_v9, %v44_v8  ;;  %v49_v17 = vld [vmem:[%s546_s4 + $0x10] sm:$0xff] }
   0x7   :  { %v51_v10 = vadd.f32 %v47_v4, %v43_v6 }
   0x9   :  { %91 = vperm.xlu1 %352, %v51_v10   ;;  %66 = vperm.xlu0 %351, %v56_v11  }
   0xa   :  { %17 = vsyncpa [#allocation5], 0  ;;  %v46_v18 = vmul.f32 %v42_v3, %v41_v15  ;;  %v58_v19 = vld [vmem:[%s544_s2 + $0x18] sm:$0xff]  ;;  %v53_v20 = vadd.f32 %v49_v17, %v45_v14  ;;  %v121_v23 = vld [vmem:[%s548_s6] sm:$0xff]  ;;  %vm145_vm0 = vcmask 261120  }
   0xb   :  { %v50_v21 = vld [vmem:[%s546_s4 + $0x18] sm:$0xff]  ;;  %v122_v24 = vld [vmem:[%s548_s6 + $0x8] sm:$0xff]  ;;  %v123_v25 = vld [vmem:[%s548_s6 + $0x10] sm:$0xff] }
   0xc   :  { %v54_v22 = vadd.f32 %v50_v21, %v46_v18  ;;  %v124_v26 = vld [vmem:[%s548_s6 + $0x18] sm:$0xff]  ;;  %v247_v27 = vld [vmem:[%s549_s7] sm:$0xff]  ;;  %v248_v28 = vld [vmem:[%s549_s7 + $0x8] sm:$0xff]  ;;  %v290_v21 = vlaneseq }
   0xd   :  { %96 = vperm.xlu1 %352, %v52_v13   ;;  %71 = vperm.xlu0 %351, %v57_v16   ;;  %v249_v29 = vld [vmem:[%s549_s7 + $0x10] sm:$0xff]  ;;  %v250_v30 = vld [vmem:[%s549_s7 + $0x18] sm:$0xff]  ;;  %v284_v31 = vld [vmem:[#allocation3] sm:$0x1] }
   0xe   :  { %v117_v32 = vld [vmem:[%s547_s5] sm:$0xff]  ;;  %v119_v33 = vld [vmem:[%s547_s5 + $0x10] sm:$0xff]  ;;  %v118_v57 = vld [vmem:[%s547_s5 + $0x8] sm:$0xff] }
   0xf   :  { %331 = vmatprep.mubr.msk.f32.mxu0 %vm145_vm0, %v117_v32  ;;  %334 = vmatprep.mubr.msk.f32.mxu1 %vm145_vm0, %v119_v33  ;;  %v310_v34 = vld [vmem:[%s543_s1] ss:$0 sm:$0xff]  ;;  %v120_v58 = vld [vmem:[%s547_s5 + $0x18] sm:$0xff]  ;;  %s394_s5 = smov [#allocation4]  }
  0x10   :  { %s302_s11 = sshll.u32 %s394_s5, 4  ;;  %s303_s11 = int_to_ptr.vmem [resolvable:$true] %s302_s11 }
  0x11   :  { %76 = vperm.xlu1 %352, %v58_v19   ;;  %101 = vperm.xlu0 %351, %v53_v20   ;;  %s369_s12 = scalar_lea.vmem %s303_s11, 16  ;;  %s373_s13 = scalar_lea.vmem %s303_s11, 32 }
  0x12   :  { %p370_p0 = scmp.ne.s32.totalorder %s303_s11, %s369_s12  ;;  %p374_p1 = scmp.lt.s32.totalorder %s303_s11, %s303_s11 }
  0x13   :  { %p375_p2 = scmp.lt.s32.totalorder %s373_s13, %s369_s12 }
  0x15   :  { %106 = vperm.xlu1 %352, %v54_v22   ;;  %127 = vperm.xlu0 %351, %v121_v23   ;;  %p376_p3 = por %p375_p2, %p374_p1 }
  0x17   :  { %p377_p4 = pnand %p376_p3, %p370_p0 }
  0x19   :  { %132 = vperm.xlu1 %352, %v122_v24   ;;  %137 = vperm.xlu0 %351, %v123_v25   ;;  %v291_v24 = vshrl.u32 %v290_v21, 7 }
  0x1d   :  { %142 = vperm.xlu1 %352, %v124_v26   ;;  %253 = vperm.xlu0 %351, %v247_v27   ;;  %v292_v27 = vsub.s32 0, %v291_v24 }
  0x21   :  { %258 = vperm.xlu1 %352, %v248_v28   ;;  %263 = vperm.xlu0 %351, %v249_v29  }
  0x25   :  { %268 = vperm.xlu1 %352, %v250_v30   ;;  %287 = vperm.xlu0 %351, %v284_v31  }
  0x84   :  { %v62_v35 = vpop.permute.xlu0 %61 }
  0x85   :  { %v85_v36 = vmul.f32 %v310_v34, %v62_v35 }
  0x88   :  { %v92_v37 = vpop.permute.xlu1 %91  ;;  %v67_v38 = vpop.permute.xlu0 %66 }
  0x89   :  { %v109_v39 = vadd.f32 %v92_v37, %v85_v36  ;;  %v86_v40 = vmul.f32 %v310_v34, %v67_v38 }
  0x8b   :  { %353 = vtanh.f32 %v109_v39 }
  0x8c   :  { %v97_v41 = vpop.permute.xlu1 %96  ;;  %v72_v43 = vpop.permute.xlu0 %71 }
  0x8d   :  { %v110_v42 = vadd.f32 %v97_v41, %v86_v40  ;;  %v87_v44 = vmul.f32 %v310_v34, %v72_v43 }
  0x8f   :  { %355 = vtanh.f32 %v110_v42 }
  0x90   :  { %v77_v45 = vpop.permute.xlu1 %76  ;;  %v102_v46 = vpop.permute.xlu0 %101 }
  0x91   :  { %v111_v47 = vadd.f32 %v102_v46, %v87_v44  ;;  %v88_v48 = vmul.f32 %v310_v34, %v77_v45 }
  0x93   :  { %357 = vtanh.f32 %v111_v47 }
  0x94   :  { %v107_v49 = vpop.permute.xlu1 %106  ;;  %v128_v59 = vpop.permute.xlu0 %127 }
  0x95   :  { %v112_v50 = vadd.f32 %v107_v49, %v88_v48  ;;  %v354_v51 = vpop.eup %353 }
  0x97   :  { %359 = vtanh.f32 %v112_v50 }
  0x98   :  { %v133_v60 = vpop.permute.xlu1 %132  ;;  %v138_v61 = vpop.permute.xlu0 %137 }
  0x99   :  { %v356_v52 = vpop.eup %355 }
  0x9a   :  { %v337_v53 = vpack.c.bf16 %v356_v52, %v354_v51 }
  0x9c   :  { %338 = vmatprep.subr.bf16.mxu0 %v337_v53  ;;  %345 = vmatprep.subr.bf16.mxu1 %v337_v53  ;;  %v143_v3 = vpop.permute.xlu1 %142  ;;  %v254_v7 = vpop.permute.xlu0 %253 }
  0x9d   :  { %340 = vmatpush3.bf16.msra.mxu0 %v337_v53  ;;  %347 = vmatpush3.bf16.msra.mxu1 %v337_v53  ;;  %v358_v54 = vpop.eup %357 }
  0xa0   :  { %v259_v9 = vpop.permute.xlu1 %258  ;;  %v264_v15 = vpop.permute.xlu0 %263 }
  0xa1   :  { %v360_v55 = vpop.eup %359 }
  0xa2   :  { %v341_v56 = vpack.c.bf16 %v360_v55, %v358_v54 }
  0xa4   :  { %342 = vmatprep.subr.bf16.mxu0 %v341_v56  ;;  %346 = vmatprep.subr.bf16.mxu1 %v341_v56  ;;  %v269_v18 = vpop.permute.xlu1 %268  ;;  %v288_v29 = vpop.permute.xlu0 %287 }
  0xa5   :  { %344 = vmatpush3.bf16.msra.mxu0 %v341_v56  ;;  %348 = vmatpush3.bf16.msra.mxu1 %v341_v56  ;;  %v293_v31 = vrot.slane %v288_v29, %v292_v27 }
  0xa8   :  { %332 = vmatmul.mubr.msk.f32.vlgmr.msra.gmra.mrb[0].mxu0 %vm145_vm0, %v118_v57  ;;  %335 = vmatmul.mubr.msk.f32.vlgmr.msra.gmra.mrb[0].mxu1 %vm145_vm0, %v120_v58 }
 0x17b   :  { %v333_v62 = vpop.f32.mrb[0].mxu0  ;;  %v336_v63 = vpop.f32.mrb[0].mxu1 }
 0x17c   :  { %v230_v0 = vadd.f32 %v333_v62, %v133_v60  ;;  %v224_v1 = vpop.f32.mrb[1].mxu0  ;;  %v234_v2 = vpop.f32.mrb[1].mxu1  ;;  %v240_v6 = vadd.f32 %v336_v63, %v143_v3 }
 0x17d   :  { %v225_v4 = vadd.f32 %v224_v1, %v128_v59  ;;  %v235_v5 = vadd.f32 %v234_v2, %v138_v61 }
 0x17e   :  { %361 = vtanh.f32 %v230_v0 }
 0x17f   :  { %363 = vtanh.f32 %v225_v4 }
 0x180   :  { %365 = vtanh.f32 %v235_v5 }
 0x181   :  { %367 = vtanh.f32 %v240_v6 }
 0x188   :  { %v362_v8 = vpop.eup %361 }
 0x189   :  { %v272_v10 = vmul.f32 %v362_v8, %v259_v9  ;;  %v364_v11 = vpop.eup %363 }
 0x18a   :  { %v366_v12 = vpop.eup %365  ;;  %v271_v13 = vmul.f32 %v364_v11, %v254_v7 }
 0x18b   :  { %v368_v14 = vpop.eup %367  ;;  %v273_v17 = vmul.f32 %v366_v12, %v264_v15 }
 0x18c   :  { %v275_v16 = vadd.f32 %v272_v10, %v271_v13  ;;  %v274_v19 = vmul.f32 %v368_v14, %v269_v18 }
 0x18e   :  { %v276_v20 = vadd.f32 %v275_v16, %v273_v17 }
 0x190   :  { %v277_v22 = vadd.f32 %v276_v20, %v274_v19 }
 0x192   :  { %v278_v23 = vrot.slane %v277_v22, 4 }
 0x194   :  { %v279_v25 = vadd.f32 %v278_v23, %v277_v22 }
 0x196   :  { %v280_v26 = vrot.slane %v279_v25, 2 }
 0x198   :  { %v281_v28 = vadd.f32 %v280_v26, %v279_v25 }
 0x19a   :  { %v282_v30 = vrot.slane %v281_v28, 1 }
 0x19c   :  { %v283_v32 = vadd.f32 %v282_v30, %v281_v28 }
 0x19e   :  { %v294_v33 = vadd.f32 %v293_v31, %v283_v32 }
 0x1a0   :  { %295 = vst [vmem:[#allocation4] sm:$0x1] %v294_v33 }
 0x1a1   :  { %380 = shalt.err (!%p377_p4)
}
 0x1a2   :  { %s381_s15 = scalar_lea.hbm %s551_s9, 16 }
 0x1a3   :  { %p382_p5 = scmp.ne.s32.totalorder %s551_s9, %s381_s15  ;;  %p385_p6 = scmp.lt.u32.totalorder %s381_s15, %s551_s9 }
 0x1a5   :  { %p387_p7 = pnand %p385_p6, %p382_p5 }
 0x1a7   :  { %390 = shalt.err (!%p387_p7)
}
 0x1a8   :  { %305 = dma.vmem_to_hbm [thread:$0]  %s303_s11, 16, %s551_s9, [#allocation5]  }
 0x1a9   :  { %391 = dma.done.wait [#allocation5], 16  }
 0x1aa   :  { %392 = vsyncadd [#allocation5], 4294967280 }
 0x1ab   :  { %309 = vsyncpa [#allocation5], 1 }

</bundles_post_ra>
